<compile_context>
chip_gen: v6e
topology: v6e:2x2x1
jax: 0.10.0
libtpu: 0.0.40
codegen_flags: <defaults>
</compile_context>

<pallas_src>
import functools

import jax
import jax.numpy as jnp
from jax import lax
from jax.experimental import pallas as pl
from jax.experimental.pallas import tpu as pltpu

_EPS = 1e-12          # F.normalize default eps
_EPS_SQ = _EPS * _EPS


def _unseen_aug_loss_kernel(x_ref, out_ref, gram_ref, *, c, tc, ragged):
    """Grid = (B/TB, KC). x_ref: (TB, N, TC) chunk of TB batch elements."""
    k = pl.program_id(1)

    @pl.when(k == 0)
    def _init():
        gram_ref[...] = jnp.zeros_like(gram_ref)

    x = x_ref[...]                                   # (TB, N, TC), native dtype

    if ragged:
        # Zero the out-of-range lanes of the clipped tail chunk before they
        # touch the Gram accumulation.  For full chunks the mask is all-true.
        lane = lax.broadcasted_iota(jnp.int32, x.shape, dimension=2)
        x = jnp.where(lane < (c - k * tc), x, 0.0)

    # bf16 feed to the MXU, f32 accumulate.  (Accuracy ~1e-2 rel vs the f32
    # PyTorch reference; keep the operands f32 here if closer parity is
    # needed — the kernel stays HBM-bound either way.)
    xb = x.astype(jnp.bfloat16)
    gram_ref[...] += lax.dot_general(
        xb, xb,
        dimension_numbers=(((2,), (2,)), ((0,), (0,))),
        preferred_element_type=jnp.float32)          # (TB, N, N) f32

    @pl.when(k == pl.num_programs(1) - 1)
    def _finalize():
        gram = gram_ref[...]                         # (TB, N, N)
        tb, n, _ = gram.shape

        # diag(G) in both layouts via one eye mask + two cheap reductions
        # (no transpose, no K=1 MXU op).  Same elements, so the diagonal we
        # subtract is bit-identical to the one inside the logsumexp.
        row = lax.broadcasted_iota(jnp.int32, (tb, n, n), 1)
        col = lax.broadcasted_iota(jnp.int32, (tb, n, n), 2)
        diag_mat = jnp.where(row == col, gram, 0.0)
        sqn_i = jnp.sum(diag_mat, axis=-1, keepdims=True)   # (TB, N, 1)
        sqn_j = jnp.sum(diag_mat, axis=-2, keepdims=True)   # (TB, 1, N)

        # 1 / max(||x||, eps) == rsqrt(max(||x||^2, eps^2))   (EUP slot)
        inv_i = lax.rsqrt(jnp.maximum(sqn_i, _EPS_SQ))
        inv_j = lax.rsqrt(jnp.maximum(sqn_j, _EPS_SQ))

        simmat = gram * inv_i * inv_j                        # cosine sims

        # loss_i = logsumexp_j(simmat[i, j]) - simmat[i, i]
        m = jnp.max(simmat, axis=-1, keepdims=True)
        lse = jnp.log(jnp.sum(jnp.exp(simmat - m), axis=-1, keepdims=True)) + m
        diag = sqn_i * inv_i * inv_i                         # == simmat[i, i]

        out_ref[...] = jnp.sum(lse - diag, axis=1, keepdims=True)   # (TB, 1, 1)


def _choose_tiles(b, n, c, elem_bytes, max_block_c):
    """Pick (TB, TC, n_k, ragged): batch-pack + ~2 MiB C tiles, 128-aligned."""
    # Batch packing: largest divisor of B with TB*N <= 256 rows per step.
    tb_cap = max(1, 256 // max(n, 1))
    tb = 1
    for cand in range(min(b, tb_cap), 0, -1):
        if b % cand == 0:
            tb = cand
            break

    # C tile: target ~2 MiB of input per grid step; cap so the double-buffered
    # input stays <= ~24 MiB (safe inside v7x's 64 MiB physical VMEM).
    row_bytes = tb * n * elem_bytes
    target_bytes = 2 * 1024 * 1024
    tc = (target_bytes // max(row_bytes, 1)) // 128 * 128
    vmem_cap_tc = ((24 * 1024 * 1024) // (2 * max(row_bytes, 1))) // 128 * 128
    tc = max(128, min(tc, max(vmem_cap_tc, 128)))
    if max_block_c is not None:
        tc = min(tc, max(128, (max_block_c // 128) * 128))

    if c <= tc:
        return tb, c, 1, False           # single full-extent chunk, no masking
    n_k = -(-c // tc)
    return tb, tc, n_k, (c % tc != 0)


@functools.partial(jax.jit, static_argnames=("max_block_c",))
def unseen_aug_loss(predict: jax.Array, *, max_block_c: int | None = None) -> jax.Array:
    """predict: (B, N, H, W) float array. Returns scalar loss (float32)."""
    b, n, h, w = predict.shape
    c = h * w

    # Free metadata reshape only — no cast, no pad, no extra HBM round-trip.
    x = predict.reshape(b, n, c)
    elem_bytes = jnp.dtype(x.dtype).itemsize

    tb, tc, n_k, ragged = _choose_tiles(b, n, c, elem_bytes, max_block_c)
    kernel = functools.partial(_unseen_aug_loss_kernel, c=c, tc=tc, ragged=ragged)

    # VMEM budget: double-buffered input block + Gram scratch + headroom,
    # clamped below v7x's 64 MiB per-core VMEM.
    vmem_bytes = 2 * tb * n * tc * elem_bytes + tb * n * n * 4
    vmem_limit = int(min(max(2 * vmem_bytes, 16 * 1024 * 1024), 48 * 1024 * 1024))

    per_batch = pl.pallas_call(
        kernel,
        out_shape=jax.ShapeDtypeStruct((b, 1, 1), jnp.float32),
        grid_spec=pltpu.PrefetchScalarGridSpec(
            num_scalar_prefetch=0,
            grid=(b // tb, n_k),
            in_specs=[pl.BlockSpec((tb, n, tc), lambda i, k: (i, 0, k))],
            out_specs=pl.BlockSpec((tb, 1, 1), lambda i, k: (i, 0, 0)),
            scratch_shapes=[
                pltpu.VMEM((tb, n, n), jnp.float32),   # Gram accumulator
            ],
        ),
        compiler_params=pltpu.CompilerParams(
            dimension_semantics=("parallel", "arbitrary"),
            vmem_limit_bytes=vmem_limit,
        ),
    )(x)

    # mean over all B*N diagonal -log-softmax entries.
    return jnp.sum(per_batch) / (b * n)


def _reference(predict: jax.Array) -> jax.Array:
    """Pure-JAX f32 reference mirroring the PyTorch module."""
    b, n, h, w = predict.shape
    x = predict.reshape(b, n, h * w).astype(jnp.float32)
    norm = jnp.sqrt(jnp.sum(x * x, axis=-1, keepdims=True))
    xn = x / jnp.maximum(norm, _EPS)
    simmat = jnp.einsum('bic,bjc->bij', xn, xn)
    logits = -jax.nn.log_softmax(simmat, axis=-1)
    diag = jnp.diagonal(logits, axis1=-2, axis2=-1)           # (B, N)
    return jnp.mean(diag)


if __name__ == "__main__":
    key = jax.random.PRNGKey(0)
    k1, k2 = jax.random.split(key)

    # (b, n, h, w) unknown-mask prediction, small shapes.
    p1 = jax.random.normal(k1, (2, 4, 16, 16), dtype=jnp.float32)
    p2 = jax.random.normal(k2, (2, 4, 16, 12), dtype=jnp.float32)

    ref1 = jax.block_until_ready(_reference(p1))
    ref3 = jax.block_until_ready(_reference(p2))

    # 1) auto tiling: single C chunk, TB=2 batch packing.
    loss1 = jax.block_until_ready(unseen_aug_loss(p1))
    assert jnp.isfinite(loss1), "loss1 not finite"
    assert jnp.allclose(loss1, ref1, atol=3e-2, rtol=3e-2), (loss1, ref1)

    # 2) forced multi-chunk C reduction (exercises the accumulator/pl.when path).
    loss2 = jax.block_until_ready(unseen_aug_loss(p1, max_block_c=128))
    assert jnp.isfinite(loss2), "loss2 not finite"
    assert jnp.allclose(loss2, ref1, atol=3e-2, rtol=3e-2), (loss2, ref1)

    # 3) multi-chunk with a ragged tail chunk (c=192 -> tc=128: in-kernel mask).
    loss3 = jax.block_until_ready(unseen_aug_loss(p2, max_block_c=128))
    assert jnp.isfinite(loss3), "loss3 not finite"
    assert jnp.allclose(loss3, ref3, atol=3e-2, rtol=3e-2), (loss3, ref3)

    print("KERNEL_OK")
</pallas_src>

<mosaic_0001>
module attributes {stable_mosaic.version = 11 : i64} {
  func.func @_unseen_aug_loss_kernel(%arg0: i32, %arg1: i32, %arg2: memref<2x4x256xf32, #tpu.memory_space<vmem>>, %arg3: memref<2x1x1xf32, #tpu.memory_space<vmem>>, %arg4: memref<2x4x4xf32, #tpu.memory_space<vmem>>) attributes {dimension_semantics = [#tpu.dimension_semantics<parallel>, #tpu.dimension_semantics<arbitrary>], iteration_bounds = array<i64: 1, 1>, scalar_prefetch = 0 : i64, scratch_operands = 1 : i64, tpu.core_type = #tpu.core_type<tc>, window_params = [{transform_indices = @transform_0, window_bounds = array<i64: 2, 4, 256>}, {transform_indices = @transform_1, window_bounds = array<i64: 2, 1, 1>}]} {
    %c0_i32 = arith.constant 0 : i32
    %0 = arith.cmpi eq, %arg1, %c0_i32 : i32
    %1 = arith.extui %0 : i1 to i32
    %c0_i32_0 = arith.constant 0 : i32
    %2 = arith.cmpi ne, %1, %c0_i32_0 : i32
    scf.if %2 {
      %cst_11 = arith.constant 0.000000e+00 : f32
      %12 = vector.broadcast %cst_11 : f32 to vector<2x4x4xf32>
      %c0_12 = arith.constant 0 : index
      %c0_13 = arith.constant 0 : index
      %c0_14 = arith.constant 0 : index
      %13 = vector.load %arg4[%c0_12, %c0_13, %c0_14] : memref<2x4x4xf32, #tpu.memory_space<vmem>>, vector<2x4x4xf32>
      tpu.vector_store %arg4[%c0_12, %c0_13, %c0_14], %12 {strides = array<i32>} : memref<2x4x4xf32, #tpu.memory_space<vmem>>, vector<2x4x4xf32>,
    } else {
    }
    %c0 = arith.constant 0 : index
    %c0_1 = arith.constant 0 : index
    %c0_2 = arith.constant 0 : index
    %3 = vector.load %arg2[%c0, %c0_1, %c0_2] : memref<2x4x256xf32, #tpu.memory_space<vmem>>, vector<2x4x256xf32>
    %4 = arith.truncf %3 : vector<2x4x256xf32> to vector<2x4x256xbf16>
    %c0_3 = arith.constant 0 : index
    %c0_4 = arith.constant 0 : index
    %c0_5 = arith.constant 0 : index
    %5 = vector.load %arg4[%c0_3, %c0_4, %c0_5] : memref<2x4x4xf32, #tpu.memory_space<vmem>>, vector<2x4x4xf32>
    %cst = arith.constant dense<0.000000e+00> : vector<2x4x4xf32>
    %6 = tpu.matmul %4, %4, %cst {dimension_numbers = #tpu.dot_dimension_numbers<[2], [2], [1], [1], [0, 0, 0, 1, 1, 1], [0], [0]>} : vector<2x4x256xbf16>, vector<2x4x256xbf16>, vector<2x4x4xf32> -> vector<2x4x4xf32>
    %7 = arith.addf %5, %6 : vector<2x4x4xf32>
    %c0_6 = arith.constant 0 : index
    %c0_7 = arith.constant 0 : index
    %c0_8 = arith.constant 0 : index
    %8 = vector.load %arg4[%c0_6, %c0_7, %c0_8] : memref<2x4x4xf32, #tpu.memory_space<vmem>>, vector<2x4x4xf32>
    tpu.vector_store %arg4[%c0_6, %c0_7, %c0_8], %7 {strides = array<i32>} : memref<2x4x4xf32, #tpu.memory_space<vmem>>, vector<2x4x4xf32>,
    %c0_i32_9 = arith.constant 0 : i32
    %9 = arith.cmpi eq, %arg1, %c0_i32_9 : i32
    %10 = arith.extui %9 : i1 to i32
    %c0_i32_10 = arith.constant 0 : i32
    %11 = arith.cmpi ne, %10, %c0_i32_10 : i32
    scf.if %11 {
      %c0_11 = arith.constant 0 : index
      %c0_12 = arith.constant 0 : index
      %c0_13 = arith.constant 0 : index
      %12 = vector.load %arg4[%c0_11, %c0_12, %c0_13] : memref<2x4x4xf32, #tpu.memory_space<vmem>>, vector<2x4x4xf32>
      %13 = tpu.iota {dimensions = array<i32: 1>} : vector<2x4x4xi32>
      %14 = tpu.iota {dimensions = array<i32: 2>} : vector<2x4x4xi32>
      %15 = arith.cmpi eq, %13, %14 : vector<2x4x4xi32>
      %cst_14 = arith.constant 0.000000e+00 : f32
      %16 = vector.broadcast %cst_14 : f32 to vector<2x4x4xf32>
      %17 = arith.select %15, %12, %16 : vector<2x4x4xi1>, vector<2x4x4xf32>
      %cst_15 = arith.constant dense<0.000000e+00> : vector<2x4xf32>
      %18 = vector.multi_reduction <add>, %17, %cst_15 [2] : vector<2x4x4xf32> to vector<2x4xf32>
      %19 = vector.shape_cast %18 : vector<2x4xf32> to vector<2x4x1xf32>
      %cst_16 = arith.constant dense<0.000000e+00> : vector<2x4xf32>
      %20 = vector.multi_reduction <add>, %17, %cst_16 [1] : vector<2x4x4xf32> to vector<2x4xf32>
      %21 = vector.shape_cast %20 : vector<2x4xf32> to vector<2x1x4xf32>
      %cst_17 = arith.constant 1.000000e-24 : f32
      %22 = vector.broadcast %cst_17 : f32 to vector<2x4x1xf32>
      %23 = arith.maximumf %19, %22 : vector<2x4x1xf32>
      %24 = math.rsqrt %23 : vector<2x4x1xf32>
      %cst_18 = arith.constant 1.000000e-24 : f32
      %25 = vector.broadcast %cst_18 : f32 to vector<2x1x4xf32>
      %26 = arith.maximumf %21, %25 : vector<2x1x4xf32>
      %27 = math.rsqrt %26 : vector<2x1x4xf32>
      %28 = vector.broadcast %24 : vector<2x4x1xf32> to vector<2x4x4xf32>
      %29 = arith.mulf %12, %28 : vector<2x4x4xf32>
      %30 = vector.broadcast %27 : vector<2x1x4xf32> to vector<2x4x4xf32>
      %31 = arith.mulf %29, %30 : vector<2x4x4xf32>
      %cst_19 = arith.constant dense<0xFF800000> : vector<2x4xf32>
      %32 = vector.multi_reduction <maximumf>, %31, %cst_19 [2] : vector<2x4x4xf32> to vector<2x4xf32>
      %33 = vector.shape_cast %32 : vector<2x4xf32> to vector<2x4x1xf32>
      %34 = vector.broadcast %33 : vector<2x4x1xf32> to vector<2x4x4xf32>
      %35 = arith.subf %31, %34 : vector<2x4x4xf32>
      %36 = math.exp %35 : vector<2x4x4xf32>
      %cst_20 = arith.constant dense<0.000000e+00> : vector<2x4xf32>
      %37 = vector.multi_reduction <add>, %36, %cst_20 [2] : vector<2x4x4xf32> to vector<2x4xf32>
      %38 = vector.shape_cast %37 : vector<2x4xf32> to vector<2x4x1xf32>
      %39 = math.log %38 : vector<2x4x1xf32>
      %40 = arith.addf %39, %33 : vector<2x4x1xf32>
      %41 = arith.mulf %19, %24 : vector<2x4x1xf32>
      %42 = arith.mulf %41, %24 : vector<2x4x1xf32>
      %43 = arith.subf %40, %42 : vector<2x4x1xf32>
      %cst_21 = arith.constant dense<0.000000e+00> : vector<2x1xf32>
      %44 = vector.multi_reduction <add>, %43, %cst_21 [1] : vector<2x4x1xf32> to vector<2x1xf32>
      %45 = vector.shape_cast %44 : vector<2x1xf32> to vector<2x1x1xf32>
      %c0_22 = arith.constant 0 : index
      %c0_23 = arith.constant 0 : index
      %c0_24 = arith.constant 0 : index
      %46 = vector.load %arg3[%c0_22, %c0_23, %c0_24] : memref<2x1x1xf32, #tpu.memory_space<vmem>>, vector<2x1x1xf32>
      tpu.vector_store %arg3[%c0_22, %c0_23, %c0_24], %45 {strides = array<i32>} : memref<2x1x1xf32, #tpu.memory_space<vmem>>, vector<2x1x1xf32>,
    } else {
    }
    return
  }
  func.func @transform_0(%arg0: i32, %arg1: i32) -> (i32, i32, i32) {
    %c0_i32 = arith.constant 0 : i32
    %c0_i32_0 = arith.constant 0 : i32
    return %arg0, %c0_i32, %arg1 : i32, i32, i32
  }
  func.func @transform_1(%arg0: i32, %arg1: i32) -> (i32, i32, i32) {
    %c0_i32 = arith.constant 0 : i32
    %c0_i32_0 = arith.constant 0 : i32
    %c0_i32_1 = arith.constant 0 : i32
    return %arg0, %c0_i32, %c0_i32_0 : i32, i32, i32
  }
}

</mosaic_0001>

<bundles_post_ra>
// kernel: unseen_aug_loss.1
= control target key start
LH: loop header
LB: loop body
LE: loop exit
PB: predicated region body
PF: predicated region fallthrough
CT: control target
= control target key end

     0   :  { %vm13_vm0 = vcmask 27648   ;;  %v228_v2 = vmov 0.0   ;;  %v120_v13 = vlaneseq  ;;  %vm187_vm2 = vcmask 1043456   ;;  %s261_s0 = inlined_call_operand.vmem [shape: f32[2,4,256], index: 0, kind: input, shape index: {}]   ;;  %s262_s1 = inlined_call_operand.vmem [shape: f32[2,1,1], index: 1, kind: output, shape index: {}]  }
   0x1   :  { %v16_v0 = vld [vmem:[%s261_s0] sm:$0xff]  ;;  %v17_v1 = vld [vmem:[%s261_s0 + $0x8] sm:$0xff]  ;;  %14 = vst.msk [vmem:[#allocation2] sm:$0xf] %vm13_vm0, %v228_v2  ;;  %15 = vst.msk [vmem:[#allocation2 + $0x4] sm:$0xf] %vm13_vm0, %v228_v2 }
   0x2   :  { %v20_v3 = vcombine.high %v16_v0, %v16_v0  ;;  %v21_v4 = vcombine.high %v17_v1, %v17_v1  ;;  %v24_v5 = vpack.c.bf16 %v16_v0, %v16_v0  ;;  %v26_v6 = vpack.c.bf16 %v17_v1, %v17_v1 }
   0x3   :  { %v121_v20 = vshrl.u32 %v120_v13, 7  ;;  %v123_v21 = vand.u32 127, %v120_v13  ;;  %vm202_vm3 = vcmask 0  }
   0x4   :  { %v25_v7 = vpack.c.bf16 %v20_v3, %v20_v3  ;;  %v27_v8 = vpack.c.bf16 %v21_v4, %v21_v4 }
   0x5   :  { %vm124_vm1 = vcmp.eq.s32.totalorder %v121_v20, %v123_v21 }
   0x6   :  { %44 = vmatprep.subr.bf16.mxu0 %v25_v7  ;;  %84 = vmatprep.subr.bf16.mxu1 %v27_v8 }
   0x7   :  { %45 = vmatpush1.bf16.xpose.msra.mxu0 %v24_v5  ;;  %85 = vmatpush1.bf16.xpose.msra.mxu1 %v26_v6 }
   0x8   :  { %62 = vmatprep.mubr.bf16.mxu0 %v25_v7  ;;  %102 = vmatprep.mubr.bf16.mxu1 %v27_v8  ;;  %v28_v9 = vld [vmem:[#allocation2] sm:$0xf]  ;;  %v29_v10 = vld [vmem:[#allocation2 + $0x4] sm:$0xf] }
   0xe   :  { %63 = vmatmul.mubr.bf16.vlgmr.msra.gmra.mxu0 %v24_v5  ;;  %103 = vmatmul.mubr.bf16.vlgmr.msra.gmra.mxu1 %v26_v6 }
  0xce   :  { %v64_v11 = vpop.f32.mrf.mxu0  ;;  %v104_v12 = vpop.f32.mrf.mxu1 }
  0xcf   :  { %v110_v14 = vadd.f32 %v64_v11, %v28_v9  ;;  %v111_v15 = vadd.f32 %v104_v12, %v29_v10 }
  0xd0   :  { %v66_v16 = vpop.f32.mrf.mxu0  ;;  %v106_v17 = vpop.f32.mrf.mxu1 }
  0xd1   :  { %113 = vst.msk [vmem:[#allocation2] sm:$0xf] %vm13_vm0, %v110_v14  ;;  %114 = vst.msk [vmem:[#allocation2 + $0x4] sm:$0xf] %vm13_vm0, %v111_v15 }
  0xd2   :  { %v67_v18 = vpop.f32.mrf.mxu0  ;;  %v107_v19 = vpop.f32.mrf.mxu1 }
  0xd4   :  { %v68_v22 = vpop.f32.mrf.mxu0  ;;  %v108_v23 = vpop.f32.mrf.mxu1 }
  0xd8   :  { %v118_v24 = vld [vmem:[#allocation2] sm:$0xf]  ;;  %v119_v25 = vld [vmem:[#allocation2 + $0x4] sm:$0xf] }
  0xd9   :  { %v125_v26 = vsel %vm124_vm1, %v118_v24, 0.0  ;;  %v126_v28 = vsel %vm124_vm1, %v119_v25, 0.0 }
  0xda   :  { %v127_v27 = vsel %vm13_vm0, %v125_v26, 0.0  ;;  %v130_v29 = vsel %vm13_vm0, %v126_v28, 0.0 }
  0xdb   :  { %128 = vadd.xlane.f32.xlu0 %v127_v27  ;;  %v133_v30 = vrot.slane %v127_v27, 4  ;;  %v139_v32 = vrot.slane %v130_v29, 4 }
  0xdd   :  { %v134_v31 = vadd.f32 %v133_v30, %v127_v27  ;;  %v140_v34 = vadd.f32 %v139_v32, %v130_v29 }
  0xdf   :  { %131 = vadd.xlane.f32.xlu0 %v130_v29  ;;  %v135_v33 = vrot.slane %v134_v31, 2  ;;  %v141_v36 = vrot.slane %v140_v34, 2 }
  0xe1   :  { %v136_v35 = vadd.f32 %v135_v33, %v134_v31  ;;  %v142_v38 = vadd.f32 %v141_v36, %v140_v34 }
  0xe3   :  { %v137_v37 = vrot.slane %v136_v35, 1  ;;  %v143_v40 = vrot.slane %v142_v38, 1 }
  0xe5   :  { %v138_v39 = vadd.f32 %v137_v37, %v136_v35  ;;  %v144_v43 = vadd.f32 %v143_v40, %v142_v38 }
  0xe7   :  { %v149_v42 = vmax.f32 %v138_v39, 1e-24  ;;  %v150_v46 = vmax.f32 %v144_v43, 1e-24 }
 0x164   :  { %v129_v41 = vpop.xlane.xlu0 %128 }
 0x165   :  { %v145_v44 = vmax.f32 %v129_v41, 1e-24 }
 0x167   :  { %212 = vrsqrt.f32 %v145_v44 }
 0x168   :  { %v132_v45 = vpop.xlane.xlu0 %131  ;;  %214 = vrsqrt.f32 %v149_v42 }
 0x169   :  { %v146_v47 = vmax.f32 %v132_v45, 1e-24 }
 0x16b   :  { %216 = vrsqrt.f32 %v146_v47 }
 0x16c   :  { %218 = vrsqrt.f32 %v150_v46 }
 0x174   :  { %v213_v48 = vpop.eup %212 }
 0x175   :  { %v181_v49 = vmul.f32 %v213_v48, %v129_v41  ;;  %v153_v50 = vmul.f32 %v213_v48, %v118_v24  ;;  %v215_v51 = vpop.eup %214 }
 0x177   :  { %v183_v52 = vmul.f32 %v213_v48, %v181_v49  ;;  %v155_v53 = vmul.f32 %v215_v51, %v153_v50 }
 0x178   :  { %v217_v54 = vpop.eup %216 }
 0x179   :  { %v157_v55 = vsel %vm13_vm0, %v155_v53, -inf  ;;  %v154_v56 = vmul.f32 %v217_v54, %v119_v25  ;;  %v219_v57 = vpop.eup %218  ;;  %v182_v10 = vmul.f32 %v217_v54, %v132_v45 }
 0x17a   :  { %158 = vmax.xlane.f32.xlu1 %v157_v55 }
 0x17b   :  { %v156_v58 = vmul.f32 %v219_v57, %v154_v56  ;;  %v184_v15 = vmul.f32 %v217_v54, %v182_v10 }
 0x17d   :  { %v160_v59 = vsel %vm13_vm0, %v156_v58, -inf }
 0x17e   :  { %161 = vmax.xlane.f32.xlu1 %v160_v59 }
 0x203   :  { %v159_v60 = vpop.xlane.xlu1 %158 }
 0x204   :  { %v163_v61 = vsub.f32 %v155_v53, %v159_v60 }
 0x206   :  { %v165_v62 = vmul.f32 1.442695, %v163_v61 }
 0x207   :  { %v162_v63 = vpop.xlane.xlu1 %161 }
 0x208   :  { %220 = vpow2.f32 %v165_v62  ;;  %v164_v0 = vsub.f32 %v156_v58, %v162_v63 }
 0x20a   :  { %v167_v1 = vmul.f32 1.442695, %v164_v0 }
 0x20c   :  { %222 = vpow2.f32 %v167_v1 }
 0x215   :  { %v221_v2 = vpop.eup %220 }
 0x216   :  { %v169_v3 = vsel %vm13_vm0, %v221_v2, 0.0 }
 0x217   :  { %170 = vadd.xlane.f32.xlu0 %v169_v3 }
 0x219   :  { %v223_v4 = vpop.eup %222 }
 0x21a   :  { %v172_v5 = vsel %vm13_vm0, %v223_v4, 0.0 }
 0x21b   :  { %173 = vadd.xlane.f32.xlu1 %v172_v5 }
 0x2a0   :  { %v171_v6 = vpop.xlane.xlu0 %170 }
 0x2a1   :  { %224 = vlog2.f32 %v171_v6 }
 0x2a4   :  { %v174_v7 = vpop.xlane.xlu1 %173 }
 0x2a5   :  { %226 = vlog2.f32 %v174_v7 }
 0x2ae   :  { %v225_v8 = vpop.eup %224 }
 0x2af   :  { %v176_v9 = vmul.f32 0.6931472, %v225_v8 }
 0x2b1   :  { %v179_v11 = vadd.f32 %v176_v9, %v159_v60 }
 0x2b2   :  { %v227_v12 = vpop.eup %226 }
 0x2b3   :  { %v185_v13 = vsub.f32 %v179_v11, %v183_v52  ;;  %v178_v14 = vmul.f32 0.6931472, %v227_v12 }
 0x2b5   :  { %v188_v16 = vsel %vm187_vm2, %v185_v13, 0.0  ;;  %v180_v17 = vadd.f32 %v178_v14, %v162_v63 }
 0x2b6   :  { %v189_v18 = vrot.slane %v188_v16, 4 }
 0x2b7   :  { %v186_v19 = vsub.f32 %v180_v17, %v184_v15 }
 0x2b8   :  { %v190_v20 = vadd.f32 %v189_v18, %v188_v16 }
 0x2b9   :  { %v195_v21 = vsel %vm187_vm2, %v186_v19, 0.0 }
 0x2ba   :  { %v191_v22 = vrot.slane %v190_v20, 2  ;;  %v196_v23 = vrot.slane %v195_v21, 4 }
 0x2bc   :  { %v192_v24 = vadd.f32 %v191_v22, %v190_v20  ;;  %v197_v25 = vadd.f32 %v196_v23, %v195_v21 }
 0x2be   :  { %v193_v26 = vrot.slane %v192_v24, 1  ;;  %v198_v27 = vrot.slane %v197_v25, 2 }
 0x2c0   :  { %v194_v28 = vadd.f32 %v193_v26, %v192_v24  ;;  %v199_v29 = vadd.f32 %v198_v27, %v197_v25 }
 0x2c2   :  { %203 = vst.msk [vmem:[%s262_s1] sm:$0x1] %vm202_vm3, %v194_v28  ;;  %v200_v30 = vrot.slane %v199_v29, 1 }
 0x2c4   :  { %v201_v31 = vadd.f32 %v200_v30, %v199_v29 }
 0x2c6   :  { %204 = vst.msk [vmem:[%s262_s1 + $0x1] sm:$0x1] %vm202_vm3, %v201_v31 }

</bundles_post_ra>
